<compile_context>
chip_gen: v5e
topology: v5e:2x2
jax: 0.10.0
libtpu: 0.0.40
codegen_flags: <defaults>
</compile_context>

<pallas_src>
import jax
import jax.numpy as jnp
from jax.experimental import pallas as pl
from jax.experimental.pallas import tpu as pltpu


def _mlp_kernel(x_ref, w1_ref, b1_ref, w2_ref, b2_ref, w3_ref, b3_ref, o_ref):
    """x_ref: [tb, F] f32; w*: [in, out] bf16; b*: [1, out] f32; o_ref: [tb, P] f32."""
    x = x_ref[...].astype(w1_ref.dtype)                                    # [tb, F] bf16
    # Layer 0 (weight-normalized Linear) + tanh, f32 accumulation on the MXU.
    h = jnp.dot(x, w1_ref[...], preferred_element_type=jnp.float32)       # [tb, h0]
    h = jnp.tanh(h + b1_ref[...])
    # Layer 1 (plain Linear) + tanh.
    h = jnp.dot(h.astype(w2_ref.dtype), w2_ref[...],
                preferred_element_type=jnp.float32)                        # [tb, h1]
    h = jnp.tanh(h + b2_ref[...])
    # Final layer (weight-normalized Linear), no nonlinearity.
    o = jnp.dot(h.astype(w3_ref.dtype), w3_ref[...],
                preferred_element_type=jnp.float32) + b3_ref[...]          # [tb, P]
    o_ref[...] = o.astype(o_ref.dtype)


def context_embedding_forward(x, params, *, block_batch=4096):
    """x: [B, input_units] float32.  params: effective (weight-normed) weights
    stored as [in, out] bf16 and biases as [1, out] f32.  Returns [B, n_params] f32."""
    B, F = x.shape
    P = params["w3"].shape[1]
    assert block_batch % 8 == 0, "block_batch must be a multiple of 8"

    # Single tile for small batches (block == full dim is always legal);
    # otherwise tile the batch axis and let Pallas mask the ragged tail.
    tb = B if B <= block_batch else block_batch
    grid = (pl.cdiv(B, tb),)

    def const_spec(a):
        # Constant block index -> the array is DMA'd once and stays in VMEM.
        return pl.BlockSpec(a.shape, lambda i: (0, 0))

    in_specs = [
        pl.BlockSpec((tb, F), lambda i: (i, 0)),     # x tile, pipelined over batch
        const_spec(params["w1"]), const_spec(params["b1"]),
        const_spec(params["w2"]), const_spec(params["b2"]),
        const_spec(params["w3"]), const_spec(params["b3"]),
    ]
    out_spec = pl.BlockSpec((tb, P), lambda i: (i, 0))

    return pl.pallas_call(
        _mlp_kernel,
        out_shape=jax.ShapeDtypeStruct((B, P), jnp.float32),
        grid=grid,
        in_specs=in_specs,
        out_specs=out_spec,
        compiler_params=pltpu.CompilerParams(
            dimension_semantics=("parallel",),
            vmem_limit_bytes=32 * 1024 * 1024,  # comfortable on v5e/v6e/v7x
        ),
    )(x, params["w1"], params["b1"], params["w2"], params["b2"],
      params["w3"], params["b3"])


def weight_norm_effective(v, g, eps=1e-12):
    """PyTorch weight_norm (dim=0) for Linear weight v [out, in]:
    W[i, :] = g[i] * v[i, :] / ||v[i, :]||."""
    norm = jnp.sqrt(jnp.sum(v * v, axis=1, keepdims=True) + eps)
    return g[:, None] * v / norm


def make_params(key, input_units, hidden_units, n_params,
                compute_dtype=jnp.bfloat16):
    """Deterministic params matching ContextEmbedding with 2 hidden layers.
    Weights stored pre-transposed as [in, out] (bf16); biases as [1, out] rows (f32)."""
    h0, h1 = hidden_units
    ks = jax.random.split(key, 8)

    # Layer 0: weight_norm(Linear(input_units, h0))
    v1 = jax.random.normal(ks[0], (h0, input_units), jnp.float32) * 0.2
    g1 = jnp.abs(jax.random.normal(ks[1], (h0,), jnp.float32)) + 0.5
    b1 = jax.random.normal(ks[2], (h0,), jnp.float32) * 0.1
    w1 = weight_norm_effective(v1, g1)

    # Layer 1: Linear(h0, h1)
    w2 = jax.random.normal(ks[3], (h1, h0), jnp.float32) * 0.2
    b2 = jax.random.normal(ks[4], (h1,), jnp.float32) * 0.1

    # Layer 2: weight_norm(Linear(h1, n_params))
    v3 = jax.random.normal(ks[5], (n_params, h1), jnp.float32) * 0.2
    g3 = jnp.abs(jax.random.normal(ks[6], (n_params,), jnp.float32)) + 0.5
    b3 = jax.random.normal(ks[7], (n_params,), jnp.float32) * 0.1
    w3 = weight_norm_effective(v3, g3)

    return {
        "w1": w1.T.astype(compute_dtype), "b1": b1[None, :].astype(jnp.float32),
        "w2": w2.T.astype(compute_dtype), "b2": b2[None, :].astype(jnp.float32),
        "w3": w3.T.astype(compute_dtype), "b3": b3[None, :].astype(jnp.float32),
    }


def reference_forward(x, params):
    """Plain-JAX reference with the same bf16 weight / f32 accumulation recipe."""
    h = jnp.dot(x.astype(params["w1"].dtype), params["w1"],
                preferred_element_type=jnp.float32)
    h = jnp.tanh(h + params["b1"])
    h = jnp.dot(h.astype(params["w2"].dtype), params["w2"],
                preferred_element_type=jnp.float32)
    h = jnp.tanh(h + params["b2"])
    o = jnp.dot(h.astype(params["w3"].dtype), params["w3"],
                preferred_element_type=jnp.float32) + params["b3"]
    return o


if __name__ == "__main__":
    key = jax.random.PRNGKey(0)
    k_x, k_p, k_x2 = jax.random.split(key, 3)

    input_units = 16        # context dimensionality
    hidden_units = (32, 32)
    n_params = 24           # transform.n_params

    params = make_params(k_p, input_units, hidden_units, n_params)

    # Small batch, single tile (typical unit-test sized call).
    x_small = jax.random.normal(k_x, (8, input_units), jnp.float32)
    out_small = jax.block_until_ready(context_embedding_forward(x_small, params))
    ref_small = reference_forward(x_small, params)
    assert out_small.shape == (8, n_params)
    assert jnp.allclose(out_small, ref_small, atol=1e-2, rtol=1e-2), \
        "small-batch mismatch vs reference"

    # Multi-tile batch with a ragged tail (exercises the pipelined grid and
    # Pallas's masked final block).
    x_big = jax.random.normal(k_x2, (300, input_units), jnp.float32)
    out_big = jax.block_until_ready(
        context_embedding_forward(x_big, params, block_batch=128))
    ref_big = reference_forward(x_big, params)
    assert out_big.shape == (300, n_params)
    assert jnp.allclose(out_big, ref_big, atol=1e-2, rtol=1e-2), \
        "multi-tile mismatch vs reference"

    print("KERNEL_OK")
</pallas_src>

<mosaic_0001>
module attributes {stable_mosaic.version = 11 : i64} {
  func.func @_mlp_kernel(%arg0: i32, %arg1: memref<8x16xf32, #tpu.memory_space<vmem>>, %arg2: memref<16x32xbf16, #tpu.memory_space<vmem>>, %arg3: memref<1x32xf32, #tpu.memory_space<vmem>>, %arg4: memref<32x32xbf16, #tpu.memory_space<vmem>>, %arg5: memref<1x32xf32, #tpu.memory_space<vmem>>, %arg6: memref<32x24xbf16, #tpu.memory_space<vmem>>, %arg7: memref<1x24xf32, #tpu.memory_space<vmem>>, %arg8: memref<8x24xf32, #tpu.memory_space<vmem>>) attributes {dimension_semantics = [#tpu.dimension_semantics<parallel>], iteration_bounds = array<i64: 1>, scalar_prefetch = 0 : i64, scratch_operands = 0 : i64, tpu.core_type = #tpu.core_type<tc>, window_params = [{transform_indices = @transform_0, window_bounds = array<i64: 8, 16>}, {pipeline_mode = #tpu.pipeline_mode<synchronous>, transform_indices = @transform_1, window_bounds = array<i64: 16, 32>}, {pipeline_mode = #tpu.pipeline_mode<synchronous>, transform_indices = @transform_2, window_bounds = array<i64: 1, 32>}, {pipeline_mode = #tpu.pipeline_mode<synchronous>, transform_indices = @transform_3, window_bounds = array<i64: 32, 32>}, {pipeline_mode = #tpu.pipeline_mode<synchronous>, transform_indices = @transform_4, window_bounds = array<i64: 1, 32>}, {pipeline_mode = #tpu.pipeline_mode<synchronous>, transform_indices = @transform_5, window_bounds = array<i64: 32, 24>}, {pipeline_mode = #tpu.pipeline_mode<synchronous>, transform_indices = @transform_6, window_bounds = array<i64: 1, 24>}, {transform_indices = @transform_7, window_bounds = array<i64: 8, 24>}]} {
    %c0 = arith.constant 0 : index
    %c0_0 = arith.constant 0 : index
    %0 = vector.load %arg1[%c0, %c0_0] : memref<8x16xf32, #tpu.memory_space<vmem>>, vector<8x16xf32>
    %1 = arith.truncf %0 : vector<8x16xf32> to vector<8x16xbf16>
    %c0_1 = arith.constant 0 : index
    %c0_2 = arith.constant 0 : index
    %2 = vector.load %arg2[%c0_1, %c0_2] : memref<16x32xbf16, #tpu.memory_space<vmem>>, vector<16x32xbf16>
    %cst = arith.constant dense<0.000000e+00> : vector<8x32xf32>
    %3 = tpu.matmul %1, %2, %cst {dimension_numbers = #tpu.dot_dimension_numbers<[1], [0], [0], [1], [0, 0, 1, 1], [], []>} : vector<8x16xbf16>, vector<16x32xbf16>, vector<8x32xf32> -> vector<8x32xf32>
    %c0_3 = arith.constant 0 : index
    %c0_4 = arith.constant 0 : index
    %4 = vector.load %arg3[%c0_3, %c0_4] : memref<1x32xf32, #tpu.memory_space<vmem>>, vector<1x32xf32>
    %5 = vector.broadcast %4 : vector<1x32xf32> to vector<8x32xf32>
    %6 = arith.addf %3, %5 : vector<8x32xf32>
    %7 = math.tanh %6 : vector<8x32xf32>
    %8 = arith.truncf %7 : vector<8x32xf32> to vector<8x32xbf16>
    %c0_5 = arith.constant 0 : index
    %c0_6 = arith.constant 0 : index
    %9 = vector.load %arg4[%c0_5, %c0_6] : memref<32x32xbf16, #tpu.memory_space<vmem>>, vector<32x32xbf16>
    %cst_7 = arith.constant dense<0.000000e+00> : vector<8x32xf32>
    %10 = tpu.matmul %8, %9, %cst_7 {dimension_numbers = #tpu.dot_dimension_numbers<[1], [0], [0], [1], [0, 0, 1, 1], [], []>} : vector<8x32xbf16>, vector<32x32xbf16>, vector<8x32xf32> -> vector<8x32xf32>
    %c0_8 = arith.constant 0 : index
    %c0_9 = arith.constant 0 : index
    %11 = vector.load %arg5[%c0_8, %c0_9] : memref<1x32xf32, #tpu.memory_space<vmem>>, vector<1x32xf32>
    %12 = vector.broadcast %11 : vector<1x32xf32> to vector<8x32xf32>
    %13 = arith.addf %10, %12 : vector<8x32xf32>
    %14 = math.tanh %13 : vector<8x32xf32>
    %15 = arith.truncf %14 : vector<8x32xf32> to vector<8x32xbf16>
    %c0_10 = arith.constant 0 : index
    %c0_11 = arith.constant 0 : index
    %16 = vector.load %arg6[%c0_10, %c0_11] : memref<32x24xbf16, #tpu.memory_space<vmem>>, vector<32x24xbf16>
    %cst_12 = arith.constant dense<0.000000e+00> : vector<8x24xf32>
    %17 = tpu.matmul %15, %16, %cst_12 {dimension_numbers = #tpu.dot_dimension_numbers<[1], [0], [0], [1], [0, 0, 1, 1], [], []>} : vector<8x32xbf16>, vector<32x24xbf16>, vector<8x24xf32> -> vector<8x24xf32>
    %c0_13 = arith.constant 0 : index
    %c0_14 = arith.constant 0 : index
    %18 = vector.load %arg7[%c0_13, %c0_14] : memref<1x24xf32, #tpu.memory_space<vmem>>, vector<1x24xf32>
    %19 = vector.broadcast %18 : vector<1x24xf32> to vector<8x24xf32>
    %20 = arith.addf %17, %19 : vector<8x24xf32>
    %c0_15 = arith.constant 0 : index
    %c0_16 = arith.constant 0 : index
    %21 = vector.load %arg8[%c0_15, %c0_16] : memref<8x24xf32, #tpu.memory_space<vmem>>, vector<8x24xf32>
    tpu.vector_store %arg8[%c0_15, %c0_16], %20 {strides = array<i32>} : memref<8x24xf32, #tpu.memory_space<vmem>>, vector<8x24xf32>,
    return
  }
  func.func @transform_0(%arg0: i32) -> (i32, i32) {
    %c0_i32 = arith.constant 0 : i32
    %c0_i32_0 = arith.constant 0 : i32
    return %arg0, %c0_i32 : i32, i32
  }
  func.func @transform_1(%arg0: i32) -> (i32, i32) {
    %c0_i32 = arith.constant 0 : i32
    %c0_i32_0 = arith.constant 0 : i32
    %c0_i32_1 = arith.constant 0 : i32
    return %c0_i32, %c0_i32_0 : i32, i32
  }
  func.func @transform_2(%arg0: i32) -> (i32, i32) {
    %c0_i32 = arith.constant 0 : i32
    %c0_i32_0 = arith.constant 0 : i32
    %c0_i32_1 = arith.constant 0 : i32
    return %c0_i32, %c0_i32_0 : i32, i32
  }
  func.func @transform_3(%arg0: i32) -> (i32, i32) {
    %c0_i32 = arith.constant 0 : i32
    %c0_i32_0 = arith.constant 0 : i32
    %c0_i32_1 = arith.constant 0 : i32
    return %c0_i32, %c0_i32_0 : i32, i32
  }
  func.func @transform_4(%arg0: i32) -> (i32, i32) {
    %c0_i32 = arith.constant 0 : i32
    %c0_i32_0 = arith.constant 0 : i32
    %c0_i32_1 = arith.constant 0 : i32
    return %c0_i32, %c0_i32_0 : i32, i32
  }
  func.func @transform_5(%arg0: i32) -> (i32, i32) {
    %c0_i32 = arith.constant 0 : i32
    %c0_i32_0 = arith.constant 0 : i32
    %c0_i32_1 = arith.constant 0 : i32
    return %c0_i32, %c0_i32_0 : i32, i32
  }
  func.func @transform_6(%arg0: i32) -> (i32, i32) {
    %c0_i32 = arith.constant 0 : i32
    %c0_i32_0 = arith.constant 0 : i32
    %c0_i32_1 = arith.constant 0 : i32
    return %c0_i32, %c0_i32_0 : i32, i32
  }
  func.func @transform_7(%arg0: i32) -> (i32, i32) {
    %c0_i32 = arith.constant 0 : i32
    %c0_i32_0 = arith.constant 0 : i32
    return %arg0, %c0_i32 : i32, i32
  }
}

</mosaic_0001>

<bundles_post_ra>
// kernel: tpu_custom_call.1
= control target key start
LH: loop header
LB: loop body
LE: loop exit
PB: predicated region body
PF: predicated region fallthrough
CT: control target
= control target key end

     0   :  { %12 = vsyncpa [#allocation3], 0  ;;  %s336_s0 = inlined_call_operand.vmem [shape: f32[8,16], index: 0, kind: input, shape index: {}]   ;;  %s337_s1 = inlined_call_operand.hbm [shape: bf16[16,32], index: 1, kind: input, shape index: {}]   ;;  %s338_s2 = inlined_call_operand.vmem [shape: f32[1,32], index: 2, kind: input, shape index: {}]   ;;  %s339_s3 = inlined_call_operand.vmem [shape: bf16[32,32], index: 3, kind: input, shape index: {}]   ;;  %s340_s4 = inlined_call_operand.vmem [shape: f32[1,32], index: 4, kind: input, shape index: {}]   ;;  %s341_s5 = inlined_call_operand.vmem [shape: bf16[32,24], index: 5, kind: input, shape index: {}]   ;;  %s342_s6 = inlined_call_operand.vmem [shape: f32[1,24], index: 6, kind: input, shape index: {}]   ;;  %s343_s7 = inlined_call_operand.hbm [shape: f32[8,24], index: 7, kind: output, shape index: {}]  }
   0x1   :  { %13 = vsyncpa [#allocation4], 0  ;;  %s20_s26 = sshll.u32 %s337_s1, 4  ;;  %s262_s27 = smov [#allocation2]   ;;  %s21_s26 = int_to_ptr.hbm [resolvable:$true] %s20_s26 }
   0x2   :  { %s22_s28 = sshll.u32 %s262_s27, 4  ;;  %s263_s29 = smov 64   ;;  %s23_s28 = int_to_ptr.vmem [resolvable:$true] %s22_s28 }
   0x3   :  { %s264_s30 = smov 4  }
   0x4   :  { %28 = dma.hbm_to_vmem [thread:$0]  %s21_s26, 128, %s23_s28, [#allocation3], %s263_s29, %s263_s29, %s264_s30  }
   0x5   :  { %258 = dma.done.wait [#allocation3], 128  }
   0x6   :  { %259 = vsyncadd [#allocation3], 4294967168  ;;  %v194_v0 = vld [vmem:[#allocation2] sm:$0xff]  ;;  %vm58_vm0 = vcmask 130048   ;;  %v196_v3 = vld [vmem:[%s339_s3 + $0x8] sm:$0xff]  ;;  %vm97_vm1 = vcmask 261120  }
   0x7   :  { %v44_v1 = vld [vmem:[%s336_s0] sm:$0xff]  ;;  %69 = vmatpush.bf16.msra.mxu0 %v194_v0  ;;  %107 = vmatpush.bf16.msra.mxu1 %v196_v3  ;;  %v198_v11 = vld [vmem:[%s341_s5 + $0x8] sm:$0xff]  ;;  %s265_s20 = smov [#allocation5]   ;;  %s161_s23 = sshll.u32 %s343_s7, 4  ;;  %vm152_vm2 = vcmask 195584   ;;  %s162_s23 = int_to_ptr.hbm [resolvable:$true] %s161_s23 }
   0x8   :  { %v45_v2 = vpack.c.bf16 %v44_v1, %v44_v1  ;;  %v195_v4 = vld [vmem:[%s339_s3] sm:$0xff]  ;;  %145 = vmatpush.bf16.msra.mxu2 %v198_v11  ;;  %s159_s21 = sshll.u32 %s265_s20, 4  ;;  %s160_s21 = int_to_ptr.vmem [resolvable:$true] %s159_s21 }
   0x9   :  { %v203_v5 = vld [vmem:[%s338_s2] ss:$0 sm:$0xff] }
   0xa   :  { %175 = vmatmul.msk.bf16.vlgmr.msra.gmra.mxu0 %vm58_vm0, %v45_v2  ;;  %v197_v12 = vld [vmem:[%s341_s5] sm:$0xff] }
   0xb   :  { %108 = vmatpush.bf16.msra.mxu1 %v195_v4  ;;  %v204_v13 = vld [vmem:[%s340_s4] ss:$0 sm:$0xff] }
   0xc   :  { %146 = vmatpush.bf16.msra.mxu2 %v197_v12  ;;  %v205_v19 = vld [vmem:[%s342_s6] ss:$0 sm:$0xff] }
  0x87   :  { %v71_v6 = vpop.f32.mrf.mxu0 }
  0x88   :  { %v72_v7 = vadd.f32 %v203_v5, %v71_v6 }
  0x8a   :  { %206 = vtanh.f32 %v72_v7 }
  0x8f   :  { %v73_v8 = vpop.f32.mrf.mxu0 }
  0x90   :  { %v207_v9 = vpop.eup %206 }
  0x91   :  { %v76_v10 = vpack.c.bf16 %v207_v9, %v207_v9 }
  0x93   :  { %184 = vmatmul.msk.bf16.vlgmr.msra.gmra.mxu1 %vm97_vm1, %v76_v10 }
 0x110   :  { %v110_v14 = vpop.f32.mrf.mxu1 }
 0x111   :  { %v111_v15 = vadd.f32 %v204_v13, %v110_v14 }
 0x113   :  { %208 = vtanh.f32 %v111_v15 }
 0x118   :  { %v112_v16 = vpop.f32.mrf.mxu1 }
 0x119   :  { %v209_v17 = vpop.eup %208 }
 0x11a   :  { %v115_v18 = vpack.c.bf16 %v209_v17, %v209_v17 }
 0x11c   :  { %193 = vmatmul.msk.bf16.vlgmr.msra.gmra.mxu2 %vm97_vm1, %v115_v18 }
 0x19f   :  { %v148_v20 = vpop.f32.mrf.mxu2 }
 0x1a0   :  { %v149_v21 = vadd.f32 %v205_v19, %v148_v20 }
 0x1a2   :  { %153 = vst.msk [vmem:[#allocation5] sm:$0xff] %vm152_vm2, %v149_v21 }
 0x1a3   :  { %164 = dma.vmem_to_hbm [thread:$0]  %s160_s21, 128, %s162_s23, [#allocation4]  }
 0x1a7   :  { %v150_v22 = vpop.f32.mrf.mxu2 }
 0x1a8   :  { %260 = dma.done.wait [#allocation4], 128  }
 0x1a9   :  { %261 = vsyncadd [#allocation4], 4294967168 }
 0x1aa   :  { %169 = vsyncpa [#allocation3], 1 }
 0x1ab   :  { %170 = vsyncpa [#allocation4], 1 }

</bundles_post_ra>
